<compile_context>
chip_gen: v7x
topology: tpu7x:2x2x1
jax: 0.10.0
libtpu: 0.0.40
codegen_flags: <defaults>
</compile_context>

<pallas_src>
import jax
import jax.numpy as jnp
from jax import lax
from jax.experimental import pallas as pl
from jax.experimental.pallas import tpu as pltpu


def _round_up(x, m):
    return ((x + m - 1) // m) * m


def _device_kind():
    try:
        return jax.devices()[0].device_kind.lower()
    except Exception:
        return ""


# ----------------------------------------------------------------------------
# Recurrent GRU kernel (time-blocked) + final Linear layer
# ----------------------------------------------------------------------------
def _make_gru_fc_kernel(seq_len, hidden_dim):
    H = hidden_dim

    def kernel(gi_ref,      # (TT, TB, G) bf16 : folded input projection, time block
               w_hh_ref,    # (H, G)      bf16 : recurrent weights (resident)
               b_hh_ref,    # (1, G)      f32
               w_fc_ref,    # (H, C_pad)  bf16
               b_fc_ref,    # (1, C_pad)  f32
               logits_ref,  # (TB, C_pad) f32 output (written at last time block)
               h_ref):      # (TB, H)     f32 VMEM scratch, persists across grid steps
        t_blk = pl.program_id(1)
        TT = gi_ref.shape[0]

        @pl.when(t_blk == 0)
        def _init():
            h_ref[...] = jnp.zeros_like(h_ref)

        # Hoisted out of the inner time loop (JAX does not CSE broadcasts/loads).
        w_hh = w_hh_ref[...]                     # (H, G) bf16
        b_hh = b_hh_ref[...]                     # (1, G) f32
        t_base = t_blk * TT

        def step(s, h_prev):
            gi = gi_ref[s].astype(jnp.float32)   # (TB, G)
            gh = (jnp.dot(h_prev.astype(jnp.bfloat16), w_hh,
                          preferred_element_type=jnp.float32)
                  + b_hh)                        # (TB, G) f32
            # Gate slices at H offsets inside the single G-lane block.
            r = jax.nn.sigmoid(gi[:, 0:H] + gh[:, 0:H])
            z = jax.nn.sigmoid(gi[:, H:2 * H] + gh[:, H:2 * H])
            n = jnp.tanh(gi[:, 2 * H:3 * H] + r * gh[:, 2 * H:3 * H])
            h_new = (1.0 - z) * n + z * h_prev
            # Identity update for padded tail timesteps (t >= seq_len).
            return jnp.where(t_base + s < seq_len, h_new, h_prev)

        h_last = lax.fori_loop(0, TT, step, h_ref[...], unroll=True)
        h_ref[...] = h_last

        @pl.when(t_blk == pl.num_programs(1) - 1)
        def _final():
            # TODO(synk): nn.Dropout(0.5) is identity in eval mode; not applied here.
            logits_ref[...] = (
                jnp.dot(h_last.astype(jnp.bfloat16), w_fc_ref[...],
                        preferred_element_type=jnp.float32)
                + b_fc_ref[...])

    return kernel


# ----------------------------------------------------------------------------
# Wrapper
# ----------------------------------------------------------------------------
def text_classifier_forward(token_ids, packed):
    """token_ids: (B, T) int32. Returns logits (B, num_classes) f32."""
    emb_proj = packed["emb_proj"]     # (V, G)     bf16 : emb @ W_ih^T + b_ih (folded)
    w_hh_T = packed["w_hh_T"]         # (H, G)     bf16
    b_hh = packed["b_hh"]             # (1, G)     f32
    w_fc_T = packed["w_fc_T"]         # (H, C_pad) bf16
    b_fc = packed["b_fc"]             # (1, C_pad) f32
    H = packed["hidden_dim"]
    num_classes = packed["num_classes"]

    B, T = token_ids.shape
    G = emb_proj.shape[1]
    C_pad = w_fc_T.shape[1]
    kind = _device_kind()

    # ---- batch tiling (parallel grid axis) ----
    B_pad = _round_up(B, 8)
    if ("v6" in kind or "v7" in kind) and B_pad >= 256:
        TB = 256                       # fill the 256-wide MXU M dimension on v6e/v7x
    elif B_pad >= 128:
        TB = 128
    else:
        TB = B_pad
    if "v7" in kind and B_pad // TB < 2 and B_pad >= 16:
        TB = max(8, _round_up(B_pad // 2, 8))   # keep both v7x TensorCores busy
    B_pad = _round_up(B_pad, TB)
    n_b = B_pad // TB

    # ---- time blocking (amortize per-grid-step overhead over TT timesteps) ----
    TT = max(1, min(T, 16))
    while TT > 1 and 2 * TT * TB * G * 2 > (8 << 20):   # double-buffered bf16 gi block
        TT //= 2
    T_pad = _round_up(T, TT)
    n_t = T_pad // TT

    # Embedding gather with the folded input projection (glue). Transpose the small id
    # matrix so the gather lands directly in time-major (T, B, G) layout.
    # TODO(synk): for very large vocab*G, switch back to an in-kernel gather + matmul
    # with scalar-prefetched token ids instead of the folded table.
    ids = jnp.transpose(token_ids)                                   # (T, B)
    ids = jnp.pad(ids, ((0, T_pad - T), (0, B_pad - B)))             # pad with padding_idx=0
    gi = jnp.take(emb_proj, ids, axis=0)                             # (T_pad, B_pad, G) bf16

    # Explicit VMEM budget (double-buffered blocks + resident weights + scratch) with slack.
    vmem_needed = (2 * TT * TB * G * 2                 # gi blocks (bf16)
                   + 2 * (H * G * 2 + H * C_pad * 2)   # w_hh, w_fc (bf16)
                   + 2 * (G + C_pad) * 4               # biases
                   + 2 * TB * C_pad * 4                # logits block
                   + TB * H * 4)                       # h scratch
    vmem_limit = int(min(32 << 20, max(2 * vmem_needed + (2 << 20), 8 << 20)))

    kernel = _make_gru_fc_kernel(seq_len=T, hidden_dim=H)
    logits_pad = pl.pallas_call(
        kernel,
        out_shape=jax.ShapeDtypeStruct((B_pad, C_pad), jnp.float32),
        grid_spec=pltpu.PrefetchScalarGridSpec(
            num_scalar_prefetch=0,
            grid=(n_b, n_t),
            in_specs=[
                pl.BlockSpec((TT, TB, G), lambda b, t: (t, b, 0)),   # gi time block
                pl.BlockSpec((H, G), lambda b, t: (0, 0)),           # w_hh_T (resident)
                pl.BlockSpec((1, G), lambda b, t: (0, 0)),           # b_hh
                pl.BlockSpec((H, C_pad), lambda b, t: (0, 0)),       # w_fc_T
                pl.BlockSpec((1, C_pad), lambda b, t: (0, 0)),       # b_fc
            ],
            out_specs=pl.BlockSpec((TB, C_pad), lambda b, t: (b, 0)),
            scratch_shapes=[pltpu.VMEM((TB, H), jnp.float32)],
        ),
        compiler_params=pltpu.CompilerParams(
            dimension_semantics=("parallel", "arbitrary"),
            vmem_limit_bytes=vmem_limit),
    )(gi, w_hh_T, b_hh, w_fc_T, b_fc)

    return logits_pad[:B, :num_classes]


# ----------------------------------------------------------------------------
# Parameters (logical PyTorch layout) and packing to padded / folded layout
# ----------------------------------------------------------------------------
def init_params(key, vocab_size, embed_dim, hidden_dim, num_classes):
    ks = jax.random.split(key, 7)
    scale = 0.1
    embedding = scale * jax.random.normal(ks[0], (vocab_size, embed_dim), jnp.float32)
    embedding = embedding.at[0].set(0.0)  # padding_idx=0 row is zero
    w_ih = scale * jax.random.normal(ks[1], (3 * hidden_dim, embed_dim), jnp.float32)
    w_hh = scale * jax.random.normal(ks[2], (3 * hidden_dim, hidden_dim), jnp.float32)
    b_ih = scale * jax.random.normal(ks[3], (3 * hidden_dim,), jnp.float32)
    b_hh = scale * jax.random.normal(ks[4], (3 * hidden_dim,), jnp.float32)
    w_fc = scale * jax.random.normal(ks[5], (num_classes, hidden_dim), jnp.float32)
    b_fc = scale * jax.random.normal(ks[6], (num_classes,), jnp.float32)
    return dict(embedding=embedding, w_ih=w_ih, w_hh=w_hh, b_ih=b_ih, b_hh=b_hh,
                w_fc=w_fc, b_fc=b_fc, hidden_dim=hidden_dim, num_classes=num_classes)


def pack_params(p):
    H = p["hidden_dim"]
    C = p["num_classes"]
    G = _round_up(3 * H, 128)          # one lane-padded block shared by all three gates
    C_pad = _round_up(C, 128)          # lane-dense logits block

    # Fold the GRU input projection into the embedding table: emb_proj[v] = emb[v]@W_ih^T + b_ih.
    # (padding_idx row 0 of emb is zero, so row 0 of emb_proj is exactly b_ih — same as on-the-fly.)
    emb_proj = p["embedding"] @ p["w_ih"].T + p["b_ih"]                              # (V, 3H) f32
    emb_proj = jnp.pad(emb_proj, ((0, 0), (0, G - 3 * H))).astype(jnp.bfloat16)      # (V, G)

    w_hh_T = jnp.pad(p["w_hh"].T, ((0, 0), (0, G - 3 * H))).astype(jnp.bfloat16)     # (H, G)
    b_hh = jnp.pad(p["b_hh"], (0, G - 3 * H)).reshape(1, -1).astype(jnp.float32)     # (1, G)
    w_fc_T = jnp.pad(p["w_fc"].T, ((0, 0), (0, C_pad - C))).astype(jnp.bfloat16)     # (H, C_pad)
    b_fc = jnp.pad(p["b_fc"], (0, C_pad - C)).reshape(1, -1).astype(jnp.float32)     # (1, C_pad)

    return {
        "emb_proj": emb_proj,
        "w_hh_T": w_hh_T,
        "b_hh": b_hh,
        "w_fc_T": w_fc_T,
        "b_fc": b_fc,
        "hidden_dim": H,
        "num_classes": C,
    }


# ----------------------------------------------------------------------------
# Pure-JAX reference (PyTorch GRU semantics) for correctness check
# ----------------------------------------------------------------------------
def reference_forward(token_ids, p):
    emb, H = p["embedding"], p["hidden_dim"]
    x = jnp.take(emb, token_ids, axis=0)                  # (B, T, E)
    B = x.shape[0]
    h0 = jnp.zeros((B, H), jnp.float32)
    w_ih, w_hh, b_ih, b_hh = p["w_ih"], p["w_hh"], p["b_ih"], p["b_hh"]

    def step(h, x_t):
        gi = x_t @ w_ih.T + b_ih
        gh = h @ w_hh.T + b_hh
        i_r, i_z, i_n = jnp.split(gi, 3, axis=1)
        h_r, h_z, h_n = jnp.split(gh, 3, axis=1)
        r = jax.nn.sigmoid(i_r + h_r)
        z = jax.nn.sigmoid(i_z + h_z)
        n = jnp.tanh(i_n + r * h_n)
        return (1.0 - z) * n + z * h, None

    h, _ = lax.scan(step, h0, jnp.transpose(x, (1, 0, 2)))
    return h @ p["w_fc"].T + p["b_fc"]


if __name__ == "__main__":
    vocab_size, embed_dim, hidden_dim, num_classes = 50, 32, 32, 4
    batch, seq_len = 2, 8

    key = jax.random.PRNGKey(0)
    pkey, xkey = jax.random.split(key)
    params = init_params(pkey, vocab_size, embed_dim, hidden_dim, num_classes)
    packed = pack_params(params)
    token_ids = jax.random.randint(xkey, (batch, seq_len), 0, vocab_size, jnp.int32)

    logits = text_classifier_forward(token_ids, packed)
    jax.block_until_ready(logits)
    assert logits.shape == (batch, num_classes)

    ref = reference_forward(token_ids, params)
    err = float(jnp.max(jnp.abs(logits - ref)))
    assert err < 5e-2, f"max abs err vs f32 reference: {err}"
    print("KERNEL_OK")
</pallas_src>

<mosaic_0001>
module attributes {stable_mosaic.version = 11 : i64} {
  func.func @kernel(%arg0: i32, %arg1: i32, %arg2: memref<8x8x128xbf16, #tpu.memory_space<vmem>>, %arg3: memref<32x128xbf16, #tpu.memory_space<vmem>>, %arg4: memref<1x128xf32, #tpu.memory_space<vmem>>, %arg5: memref<32x128xbf16, #tpu.memory_space<vmem>>, %arg6: memref<1x128xf32, #tpu.memory_space<vmem>>, %arg7: memref<8x128xf32, #tpu.memory_space<vmem>>, %arg8: memref<8x32xf32, #tpu.memory_space<vmem>>) attributes {dimension_semantics = [#tpu.dimension_semantics<parallel>, #tpu.dimension_semantics<arbitrary>], iteration_bounds = array<i64: 1, 1>, scalar_prefetch = 0 : i64, scratch_operands = 1 : i64, tpu.core_type = #tpu.core_type<tc>, window_params = [{transform_indices = @transform_0, window_bounds = array<i64: 8, 8, 128>}, {pipeline_mode = #tpu.pipeline_mode<synchronous>, transform_indices = @transform_1, window_bounds = array<i64: 32, 128>}, {pipeline_mode = #tpu.pipeline_mode<synchronous>, transform_indices = @transform_2, window_bounds = array<i64: 1, 128>}, {pipeline_mode = #tpu.pipeline_mode<synchronous>, transform_indices = @transform_3, window_bounds = array<i64: 32, 128>}, {pipeline_mode = #tpu.pipeline_mode<synchronous>, transform_indices = @transform_4, window_bounds = array<i64: 1, 128>}, {transform_indices = @transform_5, window_bounds = array<i64: 8, 128>}]} {
    %c0_i32 = arith.constant 0 : i32
    %0 = arith.cmpi eq, %arg1, %c0_i32 : i32
    %1 = arith.extui %0 : i1 to i32
    %c0_i32_0 = arith.constant 0 : i32
    %2 = arith.cmpi ne, %1, %c0_i32_0 : i32
    scf.if %2 {
      %cst_67 = arith.constant 0.000000e+00 : f32
      %307 = vector.broadcast %cst_67 : f32 to vector<8x32xf32>
      %c0_68 = arith.constant 0 : index
      %c0_69 = arith.constant 0 : index
      %308 = vector.load %arg8[%c0_68, %c0_69] : memref<8x32xf32, #tpu.memory_space<vmem>>, vector<8x32xf32>
      tpu.vector_store %arg8[%c0_68, %c0_69], %307 {strides = array<i32>} : memref<8x32xf32, #tpu.memory_space<vmem>>, vector<8x32xf32>,
    } else {
    }
    %c0 = arith.constant 0 : index
    %c0_1 = arith.constant 0 : index
    %3 = vector.load %arg3[%c0, %c0_1] : memref<32x128xbf16, #tpu.memory_space<vmem>>, vector<32x128xbf16>
    %c0_2 = arith.constant 0 : index
    %c0_3 = arith.constant 0 : index
    %4 = vector.load %arg4[%c0_2, %c0_3] : memref<1x128xf32, #tpu.memory_space<vmem>>, vector<1x128xf32>
    %c8_i32 = arith.constant 8 : i32
    %5 = arith.muli %arg1, %c8_i32 : i32
    %c0_4 = arith.constant 0 : index
    %c0_5 = arith.constant 0 : index
    %6 = vector.load %arg8[%c0_4, %c0_5] : memref<8x32xf32, #tpu.memory_space<vmem>>, vector<8x32xf32>
    %c0_i32_6 = arith.constant 0 : i32
    %7 = arith.index_cast %c0_i32_6 : i32 to index
    %c0_7 = arith.constant 0 : index
    %c0_8 = arith.constant 0 : index
    %8 = vector.load %arg2[%7, %c0_7, %c0_8] : memref<8x8x128xbf16, #tpu.memory_space<vmem>>, vector<1x8x128xbf16>
    %9 = vector.shape_cast %8 : vector<1x8x128xbf16> to vector<8x128xbf16>
    %10 = arith.extf %9 : vector<8x128xbf16> to vector<8x128xf32>
    %11 = arith.truncf %6 : vector<8x32xf32> to vector<8x32xbf16>
    %cst = arith.constant dense<0.000000e+00> : vector<8x128xf32>
    %12 = tpu.matmul %11, %3, %cst {dimension_numbers = #tpu.dot_dimension_numbers<[1], [0], [0], [1], [0, 0, 1, 1], [], []>} : vector<8x32xbf16>, vector<32x128xbf16>, vector<8x128xf32> -> vector<8x128xf32>
    %13 = vector.broadcast %4 : vector<1x128xf32> to vector<8x128xf32>
    %14 = arith.addf %12, %13 : vector<8x128xf32>
    %15 = vector.extract_strided_slice %10 {offsets = [0, 0], sizes = [8, 32], strides = [1, 1]} : vector<8x128xf32> to vector<8x32xf32>
    %16 = vector.extract_strided_slice %14 {offsets = [0, 0], sizes = [8, 32], strides = [1, 1]} : vector<8x128xf32> to vector<8x32xf32>
    %17 = arith.addf %15, %16 : vector<8x32xf32>
    %18 = arith.negf %17 : vector<8x32xf32>
    %19 = math.exp %18 : vector<8x32xf32>
    %cst_9 = arith.constant 1.000000e+00 : f32
    %20 = vector.broadcast %cst_9 : f32 to vector<8x32xf32>
    %21 = arith.addf %20, %19 : vector<8x32xf32>
    %22 = arith.divf %20, %21 : vector<8x32xf32>
    %23 = vector.extract_strided_slice %10 {offsets = [0, 32], sizes = [8, 32], strides = [1, 1]} : vector<8x128xf32> to vector<8x32xf32>
    %24 = vector.extract_strided_slice %14 {offsets = [0, 32], sizes = [8, 32], strides = [1, 1]} : vector<8x128xf32> to vector<8x32xf32>
    %25 = arith.addf %23, %24 : vector<8x32xf32>
    %26 = arith.negf %25 : vector<8x32xf32>
    %27 = math.exp %26 : vector<8x32xf32>
    %cst_10 = arith.constant 1.000000e+00 : f32
    %28 = vector.broadcast %cst_10 : f32 to vector<8x32xf32>
    %29 = arith.addf %28, %27 : vector<8x32xf32>
    %30 = arith.divf %28, %29 : vector<8x32xf32>
    %31 = vector.extract_strided_slice %10 {offsets = [0, 64], sizes = [8, 32], strides = [1, 1]} : vector<8x128xf32> to vector<8x32xf32>
    %32 = vector.extract_strided_slice %14 {offsets = [0, 64], sizes = [8, 32], strides = [1, 1]} : vector<8x128xf32> to vector<8x32xf32>
    %33 = arith.mulf %22, %32 : vector<8x32xf32>
    %34 = arith.addf %31, %33 : vector<8x32xf32>
    %35 = math.tanh %34 : vector<8x32xf32>
    %cst_11 = arith.constant 1.000000e+00 : f32
    %36 = vector.broadcast %cst_11 : f32 to vector<8x32xf32>
    %37 = arith.subf %36, %30 : vector<8x32xf32>
    %38 = arith.mulf %37, %35 : vector<8x32xf32>
    %39 = arith.mulf %30, %6 : vector<8x32xf32>
    %40 = arith.addf %38, %39 : vector<8x32xf32>
    %41 = arith.addi %5, %c0_i32_6 : i32
    %c8_i32_12 = arith.constant 8 : i32
    %42 = arith.cmpi slt, %41, %c8_i32_12 : i32
    %43 = arith.select %42, %40, %6 : vector<8x32xf32>
    %c1_i32 = arith.constant 1 : i32
    %44 = arith.index_cast %c1_i32 : i32 to index
    %c0_13 = arith.constant 0 : index
    %c0_14 = arith.constant 0 : index
    %45 = vector.load %arg2[%44, %c0_13, %c0_14] : memref<8x8x128xbf16, #tpu.memory_space<vmem>>, vector<1x8x128xbf16>
    %46 = vector.shape_cast %45 : vector<1x8x128xbf16> to vector<8x128xbf16>
    %47 = arith.extf %46 : vector<8x128xbf16> to vector<8x128xf32>
    %48 = arith.truncf %43 : vector<8x32xf32> to vector<8x32xbf16>
    %cst_15 = arith.constant dense<0.000000e+00> : vector<8x128xf32>
    %49 = tpu.matmul %48, %3, %cst_15 {dimension_numbers = #tpu.dot_dimension_numbers<[1], [0], [0], [1], [0, 0, 1, 1], [], []>} : vector<8x32xbf16>, vector<32x128xbf16>, vector<8x128xf32> -> vector<8x128xf32>
    %50 = vector.broadcast %4 : vector<1x128xf32> to vector<8x128xf32>
    %51 = arith.addf %49, %50 : vector<8x128xf32>
    %52 = vector.extract_strided_slice %47 {offsets = [0, 0], sizes = [8, 32], strides = [1, 1]} : vector<8x128xf32> to vector<8x32xf32>
    %53 = vector.extract_strided_slice %51 {offsets = [0, 0], sizes = [8, 32], strides = [1, 1]} : vector<8x128xf32> to vector<8x32xf32>
    %54 = arith.addf %52, %53 : vector<8x32xf32>
    %55 = arith.negf %54 : vector<8x32xf32>
    %56 = math.exp %55 : vector<8x32xf32>
    %cst_16 = arith.constant 1.000000e+00 : f32
    %57 = vector.broadcast %cst_16 : f32 to vector<8x32xf32>
    %58 = arith.addf %57, %56 : vector<8x32xf32>
    %59 = arith.divf %57, %58 : vector<8x32xf32>
    %60 = vector.extract_strided_slice %47 {offsets = [0, 32], sizes = [8, 32], strides = [1, 1]} : vector<8x128xf32> to vector<8x32xf32>
    %61 = vector.extract_strided_slice %51 {offsets = [0, 32], sizes = [8, 32], strides = [1, 1]} : vector<8x128xf32> to vector<8x32xf32>
    %62 = arith.addf %60, %61 : vector<8x32xf32>
    %63 = arith.negf %62 : vector<8x32xf32>
    %64 = math.exp %63 : vector<8x32xf32>
    %cst_17 = arith.constant 1.000000e+00 : f32
    %65 = vector.broadcast %cst_17 : f32 to vector<8x32xf32>
    %66 = arith.addf %65, %64 : vector<8x32xf32>
    %67 = arith.divf %65, %66 : vector<8x32xf32>
    %68 = vector.extract_strided_slice %47 {offsets = [0, 64], sizes = [8, 32], strides = [1, 1]} : vector<8x128xf32> to vector<8x32xf32>
    %69 = vector.extract_strided_slice %51 {offsets = [0, 64], sizes = [8, 32], strides = [1, 1]} : vector<8x128xf32> to vector<8x32xf32>
    %70 = arith.mulf %59, %69 : vector<8x32xf32>
    %71 = arith.addf %68, %70 : vector<8x32xf32>
    %72 = math.tanh %71 : vector<8x32xf32>
    %cst_18 = arith.constant 1.000000e+00 : f32
    %73 = vector.broadcast %cst_18 : f32 to vector<8x32xf32>
    %74 = arith.subf %73, %67 : vector<8x32xf32>
    %75 = arith.mulf %74, %72 : vector<8x32xf32>
    %76 = arith.mulf %67, %43 : vector<8x32xf32>
    %77 = arith.addf %75, %76 : vector<8x32xf32>
    %78 = arith.addi %5, %c1_i32 : i32
    %c8_i32_19 = arith.constant 8 : i32
    %79 = arith.cmpi slt, %78, %c8_i32_19 : i32
    %80 = arith.select %79, %77, %43 : vector<8x32xf32>
    %c2_i32 = arith.constant 2 : i32
    %81 = arith.index_cast %c2_i32 : i32 to index
    %c0_20 = arith.constant 0 : index
    %c0_21 = arith.constant 0 : index
    %82 = vector.load %arg2[%81, %c0_20, %c0_21] : memref<8x8x128xbf16, #tpu.memory_space<vmem>>, vector<1x8x128xbf16>
    %83 = vector.shape_cast %82 : vector<1x8x128xbf16> to vector<8x128xbf16>
    %84 = arith.extf %83 : vector<8x128xbf16> to vector<8x128xf32>
    %85 = arith.truncf %80 : vector<8x32xf32> to vector<8x32xbf16>
    %cst_22 = arith.constant dense<0.000000e+00> : vector<8x128xf32>
    %86 = tpu.matmul %85, %3, %cst_22 {dimension_numbers = #tpu.dot_dimension_numbers<[1], [0], [0], [1], [0, 0, 1, 1], [], []>} : vector<8x32xbf16>, vector<32x128xbf16>, vector<8x128xf32> -> vector<8x128xf32>
    %87 = vector.broadcast %4 : vector<1x128xf32> to vector<8x128xf32>
    %88 = arith.addf %86, %87 : vector<8x128xf32>
    %89 = vector.extract_strided_slice %84 {offsets = [0, 0], sizes = [8, 32], strides = [1, 1]} : vector<8x128xf32> to vector<8x32xf32>
    %90 = vector.extract_strided_slice %88 {offsets = [0, 0], sizes = [8, 32], strides = [1, 1]} : vector<8x128xf32> to vector<8x32xf32>
    %91 = arith.addf %89, %90 : vector<8x32xf32>
    %92 = arith.negf %91 : vector<8x32xf32>
    %93 = math.exp %92 : vector<8x32xf32>
    %cst_23 = arith.constant 1.000000e+00 : f32
    %94 = vector.broadcast %cst_23 : f32 to vector<8x32xf32>
    %95 = arith.addf %94, %93 : vector<8x32xf32>
    %96 = arith.divf %94, %95 : vector<8x32xf32>
    %97 = vector.extract_strided_slice %84 {offsets = [0, 32], sizes = [8, 32], strides = [1, 1]} : vector<8x128xf32> to vector<8x32xf32>
    %98 = vector.extract_strided_slice %88 {offsets = [0, 32], sizes = [8, 32], strides = [1, 1]} : vector<8x128xf32> to vector<8x32xf32>
    %99 = arith.addf %97, %98 : vector<8x32xf32>
    %100 = arith.negf %99 : vector<8x32xf32>
    %101 = math.exp %100 : vector<8x32xf32>
    %cst_24 = arith.constant 1.000000e+00 : f32
    %102 = vector.broadcast %cst_24 : f32 to vector<8x32xf32>
    %103 = arith.addf %102, %101 : vector<8x32xf32>
    %104 = arith.divf %102, %103 : vector<8x32xf32>
    %105 = vector.extract_strided_slice %84 {offsets = [0, 64], sizes = [8, 32], strides = [1, 1]} : vector<8x128xf32> to vector<8x32xf32>
    %106 = vector.extract_strided_slice %88 {offsets = [0, 64], sizes = [8, 32], strides = [1, 1]} : vector<8x128xf32> to vector<8x32xf32>
    %107 = arith.mulf %96, %106 : vector<8x32xf32>
    %108 = arith.addf %105, %107 : vector<8x32xf32>
    %109 = math.tanh %108 : vector<8x32xf32>
    %cst_25 = arith.constant 1.000000e+00 : f32
    %110 = vector.broadcast %cst_25 : f32 to vector<8x32xf32>
    %111 = arith.subf %110, %104 : vector<8x32xf32>
    %112 = arith.mulf %111, %109 : vector<8x32xf32>
    %113 = arith.mulf %104, %80 : vector<8x32xf32>
    %114 = arith.addf %112, %113 : vector<8x32xf32>
    %115 = arith.addi %5, %c2_i32 : i32
    %c8_i32_26 = arith.constant 8 : i32
    %116 = arith.cmpi slt, %115, %c8_i32_26 : i32
    %117 = arith.select %116, %114, %80 : vector<8x32xf32>
    %c3_i32 = arith.constant 3 : i32
    %118 = arith.index_cast %c3_i32 : i32 to index
    %c0_27 = arith.constant 0 : index
    %c0_28 = arith.constant 0 : index
    %119 = vector.load %arg2[%118, %c0_27, %c0_28] : memref<8x8x128xbf16, #tpu.memory_space<vmem>>, vector<1x8x128xbf16>
    %120 = vector.shape_cast %119 : vector<1x8x128xbf16> to vector<8x128xbf16>
    %121 = arith.extf %120 : vector<8x128xbf16> to vector<8x128xf32>
    %122 = arith.truncf %117 : vector<8x32xf32> to vector<8x32xbf16>
    %cst_29 = arith.constant dense<0.000000e+00> : vector<8x128xf32>
    %123 = tpu.matmul %122, %3, %cst_29 {dimension_numbers = #tpu.dot_dimension_numbers<[1], [0], [0], [1], [0, 0, 1, 1], [], []>} : vector<8x32xbf16>, vector<32x128xbf16>, vector<8x128xf32> -> vector<8x128xf32>
    %124 = vector.broadcast %4 : vector<1x128xf32> to vector<8x128xf32>
    %125 = arith.addf %123, %124 : vector<8x128xf32>
    %126 = vector.extract_strided_slice %121 {offsets = [0, 0], sizes = [8, 32], strides = [1, 1]} : vector<8x128xf32> to vector<8x32xf32>
    %127 = vector.extract_strided_slice %125 {offsets = [0, 0], sizes = [8, 32], strides = [1, 1]} : vector<8x128xf32> to vector<8x32xf32>
    %128 = arith.addf %126, %127 : vector<8x32xf32>
    %129 = arith.negf %128 : vector<8x32xf32>
    %130 = math.exp %129 : vector<8x32xf32>
    %cst_30 = arith.constant 1.000000e+00 : f32
    %131 = vector.broadcast %cst_30 : f32 to vector<8x32xf32>
    %132 = arith.addf %131, %130 : vector<8x32xf32>
    %133 = arith.divf %131, %132 : vector<8x32xf32>
    %134 = vector.extract_strided_slice %121 {offsets = [0, 32], sizes = [8, 32], strides = [1, 1]} : vector<8x128xf32> to vector<8x32xf32>
    %135 = vector.extract_strided_slice %125 {offsets = [0, 32], sizes = [8, 32], strides = [1, 1]} : vector<8x128xf32> to vector<8x32xf32>
    %136 = arith.addf %134, %135 : vector<8x32xf32>
    %137 = arith.negf %136 : vector<8x32xf32>
    %138 = math.exp %137 : vector<8x32xf32>
    %cst_31 = arith.constant 1.000000e+00 : f32
    %139 = vector.broadcast %cst_31 : f32 to vector<8x32xf32>
    %140 = arith.addf %139, %138 : vector<8x32xf32>
    %141 = arith.divf %139, %140 : vector<8x32xf32>
    %142 = vector.extract_strided_slice %121 {offsets = [0, 64], sizes = [8, 32], strides = [1, 1]} : vector<8x128xf32> to vector<8x32xf32>
    %143 = vector.extract_strided_slice %125 {offsets = [0, 64], sizes = [8, 32], strides = [1, 1]} : vector<8x128xf32> to vector<8x32xf32>
    %144 = arith.mulf %133, %143 : vector<8x32xf32>
    %145 = arith.addf %142, %144 : vector<8x32xf32>
    %146 = math.tanh %145 : vector<8x32xf32>
    %cst_32 = arith.constant 1.000000e+00 : f32
    %147 = vector.broadcast %cst_32 : f32 to vector<8x32xf32>
    %148 = arith.subf %147, %141 : vector<8x32xf32>
    %149 = arith.mulf %148, %146 : vector<8x32xf32>
    %150 = arith.mulf %141, %117 : vector<8x32xf32>
    %151 = arith.addf %149, %150 : vector<8x32xf32>
    %152 = arith.addi %5, %c3_i32 : i32
    %c8_i32_33 = arith.constant 8 : i32
    %153 = arith.cmpi slt, %152, %c8_i32_33 : i32
    %154 = arith.select %153, %151, %117 : vector<8x32xf32>
    %c4_i32 = arith.constant 4 : i32
    %155 = arith.index_cast %c4_i32 : i32 to index
    %c0_34 = arith.constant 0 : index
    %c0_35 = arith.constant 0 : index
    %156 = vector.load %arg2[%155, %c0_34, %c0_35] : memref<8x8x128xbf16, #tpu.memory_space<vmem>>, vector<1x8x128xbf16>
    %157 = vector.shape_cast %156 : vector<1x8x128xbf16> to vector<8x128xbf16>
    %158 = arith.extf %157 : vector<8x128xbf16> to vector<8x128xf32>
    %159 = arith.truncf %154 : vector<8x32xf32> to vector<8x32xbf16>
    %cst_36 = arith.constant dense<0.000000e+00> : vector<8x128xf32>
    %160 = tpu.matmul %159, %3, %cst_36 {dimension_numbers = #tpu.dot_dimension_numbers<[1], [0], [0], [1], [0, 0, 1, 1], [], []>} : vector<8x32xbf16>, vector<32x128xbf16>, vector<8x128xf32> -> vector<8x128xf32>
    %161 = vector.broadcast %4 : vector<1x128xf32> to vector<8x128xf32>
    %162 = arith.addf %160, %161 : vector<8x128xf32>
    %163 = vector.extract_strided_slice %158 {offsets = [0, 0], sizes = [8, 32], strides = [1, 1]} : vector<8x128xf32> to vector<8x32xf32>
    %164 = vector.extract_strided_slice %162 {offsets = [0, 0], sizes = [8, 32], strides = [1, 1]} : vector<8x128xf32> to vector<8x32xf32>
    %165 = arith.addf %163, %164 : vector<8x32xf32>
    %166 = arith.negf %165 : vector<8x32xf32>
    %167 = math.exp %166 : vector<8x32xf32>
    %cst_37 = arith.constant 1.000000e+00 : f32
    %168 = vector.broadcast %cst_37 : f32 to vector<8x32xf32>
    %169 = arith.addf %168, %167 : vector<8x32xf32>
    %170 = arith.divf %168, %169 : vector<8x32xf32>
    %171 = vector.extract_strided_slice %158 {offsets = [0, 32], sizes = [8, 32], strides = [1, 1]} : vector<8x128xf32> to vector<8x32xf32>
    %172 = vector.extract_strided_slice %162 {offsets = [0, 32], sizes = [8, 32], strides = [1, 1]} : vector<8x128xf32> to vector<8x32xf32>
    %173 = arith.addf %171, %172 : vector<8x32xf32>
    %174 = arith.negf %173 : vector<8x32xf32>
    %175 = math.exp %174 : vector<8x32xf32>
    %cst_38 = arith.constant 1.000000e+00 : f32
    %176 = vector.broadcast %cst_38 : f32 to vector<8x32xf32>
    %177 = arith.addf %176, %175 : vector<8x32xf32>
    %178 = arith.divf %176, %177 : vector<8x32xf32>
    %179 = vector.extract_strided_slice %158 {offsets = [0, 64], sizes = [8, 32], strides = [1, 1]} : vector<8x128xf32> to vector<8x32xf32>
    %180 = vector.extract_strided_slice %162 {offsets = [0, 64], sizes = [8, 32], strides = [1, 1]} : vector<8x128xf32> to vector<8x32xf32>
    %181 = arith.mulf %170, %180 : vector<8x32xf32>
    %182 = arith.addf %179, %181 : vector<8x32xf32>
    %183 = math.tanh %182 : vector<8x32xf32>
    %cst_39 = arith.constant 1.000000e+00 : f32
    %184 = vector.broadcast %cst_39 : f32 to vector<8x32xf32>
    %185 = arith.subf %184, %178 : vector<8x32xf32>
    %186 = arith.mulf %185, %183 : vector<8x32xf32>
    %187 = arith.mulf %178, %154 : vector<8x32xf32>
    %188 = arith.addf %186, %187 : vector<8x32xf32>
    %189 = arith.addi %5, %c4_i32 : i32
    %c8_i32_40 = arith.constant 8 : i32
    %190 = arith.cmpi slt, %189, %c8_i32_40 : i32
    %191 = arith.select %190, %188, %154 : vector<8x32xf32>
    %c5_i32 = arith.constant 5 : i32
    %192 = arith.index_cast %c5_i32 : i32 to index
    %c0_41 = arith.constant 0 : index
    %c0_42 = arith.constant 0 : index
    %193 = vector.load %arg2[%192, %c0_41, %c0_42] : memref<8x8x128xbf16, #tpu.memory_space<vmem>>, vector<1x8x128xbf16>
    %194 = vector.shape_cast %193 : vector<1x8x128xbf16> to vector<8x128xbf16>
    %195 = arith.extf %194 : vector<8x128xbf16> to vector<8x128xf32>
    %196 = arith.truncf %191 : vector<8x32xf32> to vector<8x32xbf16>
    %cst_43 = arith.constant dense<0.000000e+00> : vector<8x128xf32>
    %197 = tpu.matmul %196, %3, %cst_43 {dimension_numbers = #tpu.dot_dimension_numbers<[1], [0], [0], [1], [0, 0, 1, 1], [], []>} : vector<8x32xbf16>, vector<32x128xbf16>, vector<8x128xf32> -> vector<8x128xf32>
    %198 = vector.broadcast %4 : vector<1x128xf32> to vector<8x128xf32>
    %199 = arith.addf %197, %198 : vector<8x128xf32>
    %200 = vector.extract_strided_slice %195 {offsets = [0, 0], sizes = [8, 32], strides = [1, 1]} : vector<8x128xf32> to vector<8x32xf32>
    %201 = vector.extract_strided_slice %199 {offsets = [0, 0], sizes = [8, 32], strides = [1, 1]} : vector<8x128xf32> to vector<8x32xf32>
    %202 = arith.addf %200, %201 : vector<8x32xf32>
    %203 = arith.negf %202 : vector<8x32xf32>
    %204 = math.exp %203 : vector<8x32xf32>
    %cst_44 = arith.constant 1.000000e+00 : f32
    %205 = vector.broadcast %cst_44 : f32 to vector<8x32xf32>
    %206 = arith.addf %205, %204 : vector<8x32xf32>
    %207 = arith.divf %205, %206 : vector<8x32xf32>
    %208 = vector.extract_strided_slice %195 {offsets = [0, 32], sizes = [8, 32], strides = [1, 1]} : vector<8x128xf32> to vector<8x32xf32>
    %209 = vector.extract_strided_slice %199 {offsets = [0, 32], sizes = [8, 32], strides = [1, 1]} : vector<8x128xf32> to vector<8x32xf32>
    %210 = arith.addf %208, %209 : vector<8x32xf32>
    %211 = arith.negf %210 : vector<8x32xf32>
    %212 = math.exp %211 : vector<8x32xf32>
    %cst_45 = arith.constant 1.000000e+00 : f32
    %213 = vector.broadcast %cst_45 : f32 to vector<8x32xf32>
    %214 = arith.addf %213, %212 : vector<8x32xf32>
    %215 = arith.divf %213, %214 : vector<8x32xf32>
    %216 = vector.extract_strided_slice %195 {offsets = [0, 64], sizes = [8, 32], strides = [1, 1]} : vector<8x128xf32> to vector<8x32xf32>
    %217 = vector.extract_strided_slice %199 {offsets = [0, 64], sizes = [8, 32], strides = [1, 1]} : vector<8x128xf32> to vector<8x32xf32>
    %218 = arith.mulf %207, %217 : vector<8x32xf32>
    %219 = arith.addf %216, %218 : vector<8x32xf32>
    %220 = math.tanh %219 : vector<8x32xf32>
    %cst_46 = arith.constant 1.000000e+00 : f32
    %221 = vector.broadcast %cst_46 : f32 to vector<8x32xf32>
    %222 = arith.subf %221, %215 : vector<8x32xf32>
    %223 = arith.mulf %222, %220 : vector<8x32xf32>
    %224 = arith.mulf %215, %191 : vector<8x32xf32>
    %225 = arith.addf %223, %224 : vector<8x32xf32>
    %226 = arith.addi %5, %c5_i32 : i32
    %c8_i32_47 = arith.constant 8 : i32
    %227 = arith.cmpi slt, %226, %c8_i32_47 : i32
    %228 = arith.select %227, %225, %191 : vector<8x32xf32>
    %c6_i32 = arith.constant 6 : i32
    %229 = arith.index_cast %c6_i32 : i32 to index
    %c0_48 = arith.constant 0 : index
    %c0_49 = arith.constant 0 : index
    %230 = vector.load %arg2[%229, %c0_48, %c0_49] : memref<8x8x128xbf16, #tpu.memory_space<vmem>>, vector<1x8x128xbf16>
    %231 = vector.shape_cast %230 : vector<1x8x128xbf16> to vector<8x128xbf16>
    %232 = arith.extf %231 : vector<8x128xbf16> to vector<8x128xf32>
    %233 = arith.truncf %228 : vector<8x32xf32> to vector<8x32xbf16>
    %cst_50 = arith.constant dense<0.000000e+00> : vector<8x128xf32>
    %234 = tpu.matmul %233, %3, %cst_50 {dimension_numbers = #tpu.dot_dimension_numbers<[1], [0], [0], [1], [0, 0, 1, 1], [], []>} : vector<8x32xbf16>, vector<32x128xbf16>, vector<8x128xf32> -> vector<8x128xf32>
    %235 = vector.broadcast %4 : vector<1x128xf32> to vector<8x128xf32>
    %236 = arith.addf %234, %235 : vector<8x128xf32>
    %237 = vector.extract_strided_slice %232 {offsets = [0, 0], sizes = [8, 32], strides = [1, 1]} : vector<8x128xf32> to vector<8x32xf32>
    %238 = vector.extract_strided_slice %236 {offsets = [0, 0], sizes = [8, 32], strides = [1, 1]} : vector<8x128xf32> to vector<8x32xf32>
    %239 = arith.addf %237, %238 : vector<8x32xf32>
    %240 = arith.negf %239 : vector<8x32xf32>
    %241 = math.exp %240 : vector<8x32xf32>
    %cst_51 = arith.constant 1.000000e+00 : f32
    %242 = vector.broadcast %cst_51 : f32 to vector<8x32xf32>
    %243 = arith.addf %242, %241 : vector<8x32xf32>
    %244 = arith.divf %242, %243 : vector<8x32xf32>
    %245 = vector.extract_strided_slice %232 {offsets = [0, 32], sizes = [8, 32], strides = [1, 1]} : vector<8x128xf32> to vector<8x32xf32>
    %246 = vector.extract_strided_slice %236 {offsets = [0, 32], sizes = [8, 32], strides = [1, 1]} : vector<8x128xf32> to vector<8x32xf32>
    %247 = arith.addf %245, %246 : vector<8x32xf32>
    %248 = arith.negf %247 : vector<8x32xf32>
    %249 = math.exp %248 : vector<8x32xf32>
    %cst_52 = arith.constant 1.000000e+00 : f32
    %250 = vector.broadcast %cst_52 : f32 to vector<8x32xf32>
    %251 = arith.addf %250, %249 : vector<8x32xf32>
    %252 = arith.divf %250, %251 : vector<8x32xf32>
    %253 = vector.extract_strided_slice %232 {offsets = [0, 64], sizes = [8, 32], strides = [1, 1]} : vector<8x128xf32> to vector<8x32xf32>
    %254 = vector.extract_strided_slice %236 {offsets = [0, 64], sizes = [8, 32], strides = [1, 1]} : vector<8x128xf32> to vector<8x32xf32>
    %255 = arith.mulf %244, %254 : vector<8x32xf32>
    %256 = arith.addf %253, %255 : vector<8x32xf32>
    %257 = math.tanh %256 : vector<8x32xf32>
    %cst_53 = arith.constant 1.000000e+00 : f32
    %258 = vector.broadcast %cst_53 : f32 to vector<8x32xf32>
    %259 = arith.subf %258, %252 : vector<8x32xf32>
    %260 = arith.mulf %259, %257 : vector<8x32xf32>
    %261 = arith.mulf %252, %228 : vector<8x32xf32>
    %262 = arith.addf %260, %261 : vector<8x32xf32>
    %263 = arith.addi %5, %c6_i32 : i32
    %c8_i32_54 = arith.constant 8 : i32
    %264 = arith.cmpi slt, %263, %c8_i32_54 : i32
    %265 = arith.select %264, %262, %228 : vector<8x32xf32>
    %c7_i32 = arith.constant 7 : i32
    %266 = arith.index_cast %c7_i32 : i32 to index
    %c0_55 = arith.constant 0 : index
    %c0_56 = arith.constant 0 : index
    %267 = vector.load %arg2[%266, %c0_55, %c0_56] : memref<8x8x128xbf16, #tpu.memory_space<vmem>>, vector<1x8x128xbf16>
    %268 = vector.shape_cast %267 : vector<1x8x128xbf16> to vector<8x128xbf16>
    %269 = arith.extf %268 : vector<8x128xbf16> to vector<8x128xf32>
    %270 = arith.truncf %265 : vector<8x32xf32> to vector<8x32xbf16>
    %cst_57 = arith.constant dense<0.000000e+00> : vector<8x128xf32>
    %271 = tpu.matmul %270, %3, %cst_57 {dimension_numbers = #tpu.dot_dimension_numbers<[1], [0], [0], [1], [0, 0, 1, 1], [], []>} : vector<8x32xbf16>, vector<32x128xbf16>, vector<8x128xf32> -> vector<8x128xf32>
    %272 = vector.broadcast %4 : vector<1x128xf32> to vector<8x128xf32>
    %273 = arith.addf %271, %272 : vector<8x128xf32>
    %274 = vector.extract_strided_slice %269 {offsets = [0, 0], sizes = [8, 32], strides = [1, 1]} : vector<8x128xf32> to vector<8x32xf32>
    %275 = vector.extract_strided_slice %273 {offsets = [0, 0], sizes = [8, 32], strides = [1, 1]} : vector<8x128xf32> to vector<8x32xf32>
    %276 = arith.addf %274, %275 : vector<8x32xf32>
    %277 = arith.negf %276 : vector<8x32xf32>
    %278 = math.exp %277 : vector<8x32xf32>
    %cst_58 = arith.constant 1.000000e+00 : f32
    %279 = vector.broadcast %cst_58 : f32 to vector<8x32xf32>
    %280 = arith.addf %279, %278 : vector<8x32xf32>
    %281 = arith.divf %279, %280 : vector<8x32xf32>
    %282 = vector.extract_strided_slice %269 {offsets = [0, 32], sizes = [8, 32], strides = [1, 1]} : vector<8x128xf32> to vector<8x32xf32>
    %283 = vector.extract_strided_slice %273 {offsets = [0, 32], sizes = [8, 32], strides = [1, 1]} : vector<8x128xf32> to vector<8x32xf32>
    %284 = arith.addf %282, %283 : vector<8x32xf32>
    %285 = arith.negf %284 : vector<8x32xf32>
    %286 = math.exp %285 : vector<8x32xf32>
    %cst_59 = arith.constant 1.000000e+00 : f32
    %287 = vector.broadcast %cst_59 : f32 to vector<8x32xf32>
    %288 = arith.addf %287, %286 : vector<8x32xf32>
    %289 = arith.divf %287, %288 : vector<8x32xf32>
    %290 = vector.extract_strided_slice %269 {offsets = [0, 64], sizes = [8, 32], strides = [1, 1]} : vector<8x128xf32> to vector<8x32xf32>
    %291 = vector.extract_strided_slice %273 {offsets = [0, 64], sizes = [8, 32], strides = [1, 1]} : vector<8x128xf32> to vector<8x32xf32>
    %292 = arith.mulf %281, %291 : vector<8x32xf32>
    %293 = arith.addf %290, %292 : vector<8x32xf32>
    %294 = math.tanh %293 : vector<8x32xf32>
    %cst_60 = arith.constant 1.000000e+00 : f32
    %295 = vector.broadcast %cst_60 : f32 to vector<8x32xf32>
    %296 = arith.subf %295, %289 : vector<8x32xf32>
    %297 = arith.mulf %296, %294 : vector<8x32xf32>
    %298 = arith.mulf %289, %265 : vector<8x32xf32>
    %299 = arith.addf %297, %298 : vector<8x32xf32>
    %300 = arith.addi %5, %c7_i32 : i32
    %c8_i32_61 = arith.constant 8 : i32
    %301 = arith.cmpi slt, %300, %c8_i32_61 : i32
    %302 = arith.select %301, %299, %265 : vector<8x32xf32>
    %c8_i32_62 = arith.constant 8 : i32
    %c0_63 = arith.constant 0 : index
    %c0_64 = arith.constant 0 : index
    %303 = vector.load %arg8[%c0_63, %c0_64] : memref<8x32xf32, #tpu.memory_space<vmem>>, vector<8x32xf32>
    tpu.vector_store %arg8[%c0_63, %c0_64], %302 {strides = array<i32>} : memref<8x32xf32, #tpu.memory_space<vmem>>, vector<8x32xf32>,
    %c0_i32_65 = arith.constant 0 : i32
    %304 = arith.cmpi eq, %arg1, %c0_i32_65 : i32
    %305 = arith.extui %304 : i1 to i32
    %c0_i32_66 = arith.constant 0 : i32
    %306 = arith.cmpi ne, %305, %c0_i32_66 : i32
    scf.if %306 {
      %307 = arith.truncf %302 : vector<8x32xf32> to vector<8x32xbf16>
      %c0_67 = arith.constant 0 : index
      %c0_68 = arith.constant 0 : index
      %308 = vector.load %arg5[%c0_67, %c0_68] : memref<32x128xbf16, #tpu.memory_space<vmem>>, vector<32x128xbf16>
      %cst_69 = arith.constant dense<0.000000e+00> : vector<8x128xf32>
      %309 = tpu.matmul %307, %308, %cst_69 {dimension_numbers = #tpu.dot_dimension_numbers<[1], [0], [0], [1], [0, 0, 1, 1], [], []>} : vector<8x32xbf16>, vector<32x128xbf16>, vector<8x128xf32> -> vector<8x128xf32>
      %c0_70 = arith.constant 0 : index
      %c0_71 = arith.constant 0 : index
      %310 = vector.load %arg6[%c0_70, %c0_71] : memref<1x128xf32, #tpu.memory_space<vmem>>, vector<1x128xf32>
      %311 = vector.broadcast %310 : vector<1x128xf32> to vector<8x128xf32>
      %312 = arith.addf %309, %311 : vector<8x128xf32>
      %c0_72 = arith.constant 0 : index
      %c0_73 = arith.constant 0 : index
      %313 = vector.load %arg7[%c0_72, %c0_73] : memref<8x128xf32, #tpu.memory_space<vmem>>, vector<8x128xf32>
      tpu.vector_store %arg7[%c0_72, %c0_73], %312 {strides = array<i32>} : memref<8x128xf32, #tpu.memory_space<vmem>>, vector<8x128xf32>,
    } else {
    }
    return
  }
  func.func @transform_0(%arg0: i32, %arg1: i32) -> (i32, i32, i32) {
    %c0_i32 = arith.constant 0 : i32
    %c0_i32_0 = arith.constant 0 : i32
    return %arg1, %arg0, %c0_i32 : i32, i32, i32
  }
  func.func @transform_1(%arg0: i32, %arg1: i32) -> (i32, i32) {
    %c0_i32 = arith.constant 0 : i32
    %c0_i32_0 = arith.constant 0 : i32
    %c0_i32_1 = arith.constant 0 : i32
    return %c0_i32, %c0_i32_0 : i32, i32
  }
  func.func @transform_2(%arg0: i32, %arg1: i32) -> (i32, i32) {
    %c0_i32 = arith.constant 0 : i32
    %c0_i32_0 = arith.constant 0 : i32
    %c0_i32_1 = arith.constant 0 : i32
    return %c0_i32, %c0_i32_0 : i32, i32
  }
  func.func @transform_3(%arg0: i32, %arg1: i32) -> (i32, i32) {
    %c0_i32 = arith.constant 0 : i32
    %c0_i32_0 = arith.constant 0 : i32
    %c0_i32_1 = arith.constant 0 : i32
    return %c0_i32, %c0_i32_0 : i32, i32
  }
  func.func @transform_4(%arg0: i32, %arg1: i32) -> (i32, i32) {
    %c0_i32 = arith.constant 0 : i32
    %c0_i32_0 = arith.constant 0 : i32
    %c0_i32_1 = arith.constant 0 : i32
    return %c0_i32, %c0_i32_0 : i32, i32
  }
  func.func @transform_5(%arg0: i32, %arg1: i32) -> (i32, i32) {
    %c0_i32 = arith.constant 0 : i32
    %c0_i32_0 = arith.constant 0 : i32
    return %arg0, %c0_i32 : i32, i32
  }
}

</mosaic_0001>

<bundles_post_ra>
// kernel: tpu_custom_call.1
= control target key start
LH: loop header
LB: loop body
LE: loop exit
PB: predicated region body
PF: predicated region fallthrough
CT: control target
= control target key end

     0   :  { %10 = vsyncpa [#allocation4], 0  ;;  %s1344_s0 = inlined_call_operand.hbm [shape: bf16[8,8,128], index: 0, kind: input, shape index: {}]   ;;  %s1345_s1 = inlined_call_operand.hbm [shape: bf16[32,128], index: 1, kind: input, shape index: {}]   ;;  %s1346_s2 = inlined_call_operand.vmem [shape: f32[1,128], index: 2, kind: input, shape index: {}]   ;;  %s1347_s3 = inlined_call_operand.hbm [shape: bf16[32,128], index: 3, kind: input, shape index: {}]   ;;  %s1348_s4 = inlined_call_operand.vmem [shape: f32[1,128], index: 4, kind: input, shape index: {}]   ;;  %s1349_s5 = inlined_call_operand.hbm [shape: f32[8,128], index: 5, kind: output, shape index: {}]  }
   0x1   :  { %11 = vsyncpa [#allocation7], 0 }
   0x2   :  { %12 = vsyncpa [#allocation5], 0  ;;  %s1123_s18 = smov [#allocation6]   ;;  %s1124_s20 = smov [#allocation3]  }
   0x3   :  { %s30_s19 = sshll.u32 %s1123_s18, 4  ;;  %s18_s21 = sshll.u32 %s1124_s20, 4  ;;  %s31_s19 = int_to_ptr.vmem [resolvable:$true] %s30_s19  ;;  %s1163_s21 = int_to_ptr.vmem [resolvable:$true] %s18_s21 }
   0x4   :  { %s1029_s24 = scalar_lea.hbm %s1345_s1, 256 }
   0x5   :  { %p1030_p0 = scmp.ne.s32.totalorder %s1345_s1, %s1029_s24  ;;  %p1033_p1 = scmp.lt.u32.totalorder %s1029_s24, %s1345_s1 }
   0x7   :  { %p1035_p2 = pnand %p1033_p1, %p1030_p0 }
   0x9   :  { %1038 = shalt.err (!%p1035_p2)
}
   0xa   :  { %s1039_s29 = scalar_lea.vmem %s31_s19, 256  ;;  %p1044_p4 = scmp.lt.s32.totalorder %s31_s19, %s31_s19 }
   0xb   :  { %p1040_p3 = scmp.ne.s32.totalorder %s31_s19, %s1039_s29  ;;  %p1045_p5 = scmp.lt.s32.totalorder %s1039_s29, %s1039_s29 }
   0xd   :  { %p1046_p6 = por %p1045_p5, %p1044_p4 }
   0xf   :  { %p1047_p7 = pnand %p1046_p6, %p1040_p3 }
  0x11   :  { %1050 = shalt.err (!%p1047_p7)
}
  0x12   :  { %s1125_s30 = smov 64   ;;  %s1126_s6 = smov 4  }
  0x13   :  { %36 = dma.hbm_to_vmem [thread:$0]  %s1345_s1, 256, %s31_s19, [#allocation7], %s1125_s30, %s1125_s30, %s1126_s6  }
  0x14   :  { %s1051_s11 = scalar_lea.hbm %s1344_s0, 512 }
  0x15   :  { %p1052_p8 = scmp.ne.s32.totalorder %s1344_s0, %s1051_s11  ;;  %p1055_p9 = scmp.lt.u32.totalorder %s1051_s11, %s1344_s0 }
  0x17   :  { %p1057_p10 = pnand %p1055_p9, %p1052_p8 }
  0x19   :  { %1060 = shalt.err (!%p1057_p10)
}
  0x1a   :  { %s1061_s16 = scalar_lea.vmem %s1163_s21, 512  ;;  %p1066_p12 = scmp.lt.s32.totalorder %s1163_s21, %s1163_s21 }
  0x1b   :  { %p1062_p11 = scmp.ne.s32.totalorder %s1163_s21, %s1061_s16  ;;  %p1067_p13 = scmp.lt.s32.totalorder %s1061_s16, %s1061_s16 }
  0x1d   :  { %p1068_p0 = por %p1067_p13, %p1066_p12 }
  0x1f   :  { %p1069_p1 = pnand %p1068_p0, %p1062_p11 }
  0x21   :  { %1072 = shalt.err (!%p1069_p1)
}
  0x22   :  { %24 = dma.hbm_to_vmem [thread:$0]  %s1344_s0, 512, %s1163_s21, [#allocation4], %s1125_s30, %s1125_s30, %s1126_s6  }
  0x23   :  { %s1127_s18 = smov [#allocation8]   ;;  %s1073_s23 = scalar_lea.hbm %s1347_s3, 256 }
  0x24   :  { %s44_s19 = sshll.u32 %s1127_s18, 4  ;;  %p1074_p2 = scmp.ne.s32.totalorder %s1347_s3, %s1073_s23  ;;  %s45_s19 = int_to_ptr.vmem [resolvable:$true] %s44_s19 }
  0x25   :  { %p1077_p3 = scmp.lt.u32.totalorder %s1073_s23, %s1347_s3 }
  0x27   :  { %p1079_p4 = pnand %p1077_p3, %p1074_p2 }
  0x29   :  { %1082 = shalt.err (!%p1079_p4)
}
  0x2a   :  { %s1083_s28 = scalar_lea.vmem %s45_s19, 256  ;;  %p1088_p6 = scmp.lt.s32.totalorder %s45_s19, %s45_s19 }
  0x2b   :  { %p1084_p5 = scmp.ne.s32.totalorder %s45_s19, %s1083_s28  ;;  %p1089_p7 = scmp.lt.s32.totalorder %s1083_s28, %s1083_s28 }
  0x2d   :  { %p1090_p8 = por %p1089_p7, %p1088_p6 }
  0x2f   :  { %p1091_p9 = pnand %p1090_p8, %p1084_p5 }
  0x31   :  { %1094 = shalt.err (!%p1091_p9)
}
  0x32   :  { %50 = dma.hbm_to_vmem [thread:$0]  %s1347_s3, 256, %s45_s19, [#allocation7], %s1125_s30, %s1125_s30, %s1126_s6  }
  0x33   :  { %1117 = dma.done.wait [#allocation4], 512  }
  0x34   :  { %1118 = vsyncadd [#allocation4], 4294966784 }
  0x35   :  { %1119 = dma.done.wait [#allocation7], 512  }
  0x36   :  { %1120 = vsyncadd [#allocation7], 4294966784  ;;  %vm67_vm0 = vcmask 261120   ;;  %v1128_v0 = vmov 0.0   ;;  %vm1129_vm1 = vmmov 0   ;;  %v1223_v1 = vld [vmem:[#allocation6] sm:$0xff]  }
  0x37   :  { %895 = vmatprep.subr.bf16.mxu0 %v1128_v0  ;;  %899 = vmatprep.mubr.msk.bf16.mxu0 %vm1129_vm1, %v1128_v0  ;;  %68 = vst.msk [vmem:[#allocation2] sm:$0xff] %vm67_vm0, %v1128_v0  ;;  %v1226_v2 = vld [vmem:[#allocation6 + $0x8] sm:$0xff]   ;;  %v1245_v5 = vld [vmem:[%s1346_s2] ss:$0 sm:$0xff]  ;;  %v76_v11 = vld [vmem:[#allocation3] sm:$0xff]   ;;  %s1130_s2 = smov 96  }
  0x38   :  { %903 = vmatprep.subr.bf16.mxu1 %v1128_v0  ;;  %907 = vmatprep.mubr.msk.bf16.mxu1 %vm1129_vm1, %v1128_v0  ;;  %v77_v12 = vunpack.c.l.bf16 %v76_v11  ;;  %s1131_s6 = smov 32   ;;  %v178_v36 = vunpack.c.h.bf16 %v76_v11  ;;  %v259_v59 = vld [vmem:[#allocation3 + $0x8] sm:$0xff]   ;;  %s1132_s8 = smov [#allocation9]  }
  0x39   :  { %896 = vmatpush3.bf16.msra.mxu0 %v1223_v1  ;;  %904 = vmatpush3.bf16.msra.mxu1 %v1223_v1  ;;  %v260_v60 = vunpack.c.l.bf16 %v259_v59  ;;  %s835_s9 = sshll.u32 %s1132_s8, 4  ;;  %s836_s9 = int_to_ptr.vmem [resolvable:$true] %s835_s9 }
  0x3a   :  { %897 = vmatprep.subr.bf16.mxu0 %v1128_v0  ;;  %905 = vmatprep.subr.bf16.mxu1 %v1128_v0  ;;  %s1095_s10 = scalar_lea.vmem %s836_s9, 128  ;;  %p1100_p11 = scmp.lt.s32.totalorder %s836_s9, %s836_s9 }
  0x3b   :  { %p1096_p10 = scmp.ne.s32.totalorder %s836_s9, %s1095_s10  ;;  %p1101_p12 = scmp.lt.s32.totalorder %s1095_s10, %s1095_s10 }
  0x3d   :  { %898 = vmatpush3.bf16.msra.mxu0 %v1226_v2  ;;  %906 = vmatpush3.bf16.msra.mxu1 %v1226_v2  ;;  %p1102_p13 = por %p1101_p12, %p1100_p11 }
  0x3e   :  { %v75_v3 = vld [vmem:[#allocation2] sm:$0xff]  ;;  %911 = vmatprep.subr.bf16.mxu0 %v1128_v0  ;;  %919 = vmatprep.subr.bf16.mxu1 %v1128_v0 }
  0x3f   :  { %v78_v4 = vpack.c.bf16 %v75_v3, %v75_v3  ;;  %p1103_p0 = pnand %p1102_p13, %p1096_p10 }
  0x41   :  { %900 = vmatmul.mubr.msk.bf16.vlgmr.msra.gmra.mrb[0].mxu0 %vm67_vm0, %v78_v4 }
  0x42   :  { %912 = vmatpush3.bf16.msra.mxu0 %v1223_v1  ;;  %915 = vmatprep.mubr.msk.bf16.mxu0 %vm1129_vm1, %v1128_v0 }
  0x43   :  { %913 = vmatprep.subr.bf16.mxu0 %v1128_v0 }
  0x46   :  { %914 = vmatpush3.bf16.msra.mxu0 %v1226_v2 }
  0x47   :  { %927 = vmatprep.subr.bf16.mxu0 %v1128_v0 }
 0x114   :  { %v135_v6 = vpop.f32.mrb[0].mxu0 }
 0x115   :  { %v136_v7 = vadd.f32 %v1245_v5, %v135_v6  ;;  %v901_v8 = vpop.f32.mrb[1].mxu0 }
 0x116   :  { %v138_v9 = vpop.f32.mrb[2].mxu0 }
 0x117   :  { %149 = vrot.lane.b32.xlu0 %v136_v7, %s1125_s30  ;;  %v902_v10 = vpop.f32.mrb[3].mxu0  ;;  %v141_v13 = vadd.f32 %v136_v7, %v77_v12 }
 0x119   :  { %v849_v14 = vmul.f32 -1.442695, %v141_v13 }
 0x11b   :  { %981 = vpow2.f32 %v849_v14 }
 0x125   :  { %v982_v15 = vpop.eup %981 }
 0x126   :  { %v145_v16 = vadd.f32 1.0, %v982_v15 }
 0x128   :  { %983 = vrcp.f32 %v145_v16 }
 0x132   :  { %v984_v17 = vpop.eup %983 }
 0x133   :  { %v159_v24 = vsub.f32 1.0, %v984_v17 }
 0x189   :  { %v150_v18 = vpop.permute.xlu0 %149 }
 0x18a   :  { %v152_v19 = vmul.f32 %v984_v17, %v150_v18 }
 0x18c   :  { %154 = vrot.lane.b32.xlu0 %v152_v19, %s1125_s30 }
 0x1fe   :  { %v155_v20 = vpop.permute.xlu0 %154 }
 0x1ff   :  { %v157_v21 = vadd.f32 %v155_v20, %v77_v12 }
 0x201   :  { %985 = vtanh.f32 %v157_v21 }
 0x20b   :  { %v986_v22 = vpop.eup %985 }
 0x20c   :  { %161 = vrot.lane.b32.xlu1 %v986_v22, %s1130_s2 }
 0x210   :  { %166 = vrot.lane.b32.xlu1 %v75_v3, %s1131_s6 }
 0x27e   :  { %v162_v23 = vpop.permute.xlu1 %161 }
 0x27f   :  { %v164_v26 = vmul.f32 %v162_v23, %v159_v24  ;;  %v342_v23 = vunpack.c.h.bf16 %v259_v59 }
 0x282   :  { %v167_v25 = vpop.permute.xlu1 %166 }
 0x283   :  { %v169_v27 = vmul.f32 %v984_v17, %v167_v25 }
 0x285   :  { %v170_v28 = vadd.f32 %v169_v27, %v164_v26 }
 0x287   :  { %v179_v29 = vpack.c.bf16 %v170_v28, %v170_v28 }
 0x289   :  { %181 = vrot.lane.b32.xlu0 %v179_v29, %s1130_s2 }
 0x2fb   :  { %v182_v30 = vpop.permute.xlu0 %181 }
 0x2fc   :  { %908 = vmatmul.mubr.msk.bf16.vlgmr.msra.gmra.mrb[0].mxu1 %vm67_vm0, %v182_v30 }
 0x2fd   :  { %920 = vmatpush3.bf16.msra.mxu1 %v1223_v1  ;;  %923 = vmatprep.mubr.msk.bf16.mxu1 %vm1129_vm1, %v1128_v0 }
 0x2fe   :  { %921 = vmatprep.subr.bf16.mxu1 %v1128_v0 }
 0x301   :  { %922 = vmatpush3.bf16.msra.mxu1 %v1226_v2 }
 0x302   :  { %935 = vmatprep.subr.bf16.mxu1 %v1128_v0 }
 0x3cf   :  { %v220_v31 = vpop.f32.mrb[0].mxu1 }
 0x3d0   :  { %v221_v32 = vadd.f32 %v1245_v5, %v220_v31  ;;  %v909_v33 = vpop.f32.mrb[1].mxu1 }
 0x3d1   :  { %v223_v34 = vpop.f32.mrb[2].mxu1 }
 0x3d2   :  { %234 = vrot.lane.b32.xlu1 %v221_v32, %s1125_s30  ;;  %v910_v35 = vpop.f32.mrb[3].mxu1  ;;  %v226_v37 = vadd.f32 %v221_v32, %v178_v36 }
 0x3d4   :  { %v851_v38 = vmul.f32 -1.442695, %v226_v37 }
 0x3d6   :  { %987 = vpow2.f32 %v851_v38 }
 0x3e0   :  { %v988_v39 = vpop.eup %987 }
 0x3e1   :  { %v230_v40 = vadd.f32 1.0, %v988_v39 }
 0x3e3   :  { %989 = vrcp.f32 %v230_v40 }
 0x3ed   :  { %v990_v41 = vpop.eup %989 }
 0x3ee   :  { %v244_v47 = vsub.f32 1.0, %v990_v41  ;;  %v250_v49 = vmul.f32 %v990_v41, %v170_v28 }
 0x444   :  { %v235_v42 = vpop.permute.xlu1 %234 }
 0x445   :  { %v237_v43 = vmul.f32 %v990_v41, %v235_v42 }
 0x447   :  { %239 = vrot.lane.b32.xlu0 %v237_v43, %s1125_s30 }
 0x4b9   :  { %v240_v44 = vpop.permute.xlu0 %239 }
 0x4ba   :  { %v242_v45 = vadd.f32 %v240_v44, %v178_v36 }
 0x4bc   :  { %991 = vtanh.f32 %v242_v45 }
 0x4c6   :  { %v992_v46 = vpop.eup %991 }
 0x4c7   :  { %246 = vrot.lane.b32.xlu1 %v992_v46, %s1130_s2  ;;  %v423_v46 = vld [vmem:[#allocation3 + $0x10] sm:$0xff]  }
 0x539   :  { %v247_v48 = vpop.permute.xlu1 %246 }
 0x53a   :  { %v249_v50 = vmul.f32 %v247_v48, %v244_v47  ;;  %v424_v47 = vunpack.c.l.bf16 %v423_v46 }
 0x53c   :  { %v251_v51 = vadd.f32 %v250_v49, %v249_v50 }
 0x53e   :  { %v261_v52 = vpack.c.bf16 %v251_v51, %v251_v51 }
 0x540   :  { %263 = vrot.lane.b32.xlu0 %v261_v52, %s1130_s2 }
 0x5b2   :  { %v264_v53 = vpop.permute.xlu0 %263 }
 0x5b3   :  { %916 = vmatmul.mubr.msk.bf16.vlgmr.msra.gmra.mrb[4].mxu0 %vm67_vm0, %v264_v53 }
 0x5b4   :  { %928 = vmatpush3.bf16.msra.mxu0 %v1223_v1  ;;  %931 = vmatprep.mubr.msk.bf16.mxu0 %vm1129_vm1, %v1128_v0 }
 0x5b5   :  { %929 = vmatprep.subr.bf16.mxu0 %v1128_v0 }
 0x5b8   :  { %930 = vmatpush3.bf16.msra.mxu0 %v1226_v2 }
 0x5b9   :  { %943 = vmatprep.subr.bf16.mxu0 %v1128_v0 }
 0x686   :  { %v302_v54 = vpop.f32.mrb[4].mxu0 }
 0x687   :  { %v303_v55 = vadd.f32 %v1245_v5, %v302_v54  ;;  %v917_v56 = vpop.f32.mrb[5].mxu0 }
 0x688   :  { %v305_v57 = vpop.f32.mrb[6].mxu0 }
 0x689   :  { %316 = vrot.lane.b32.xlu1 %v303_v55, %s1125_s30  ;;  %v918_v58 = vpop.f32.mrb[7].mxu0  ;;  %v308_v61 = vadd.f32 %v303_v55, %v260_v60 }
 0x68b   :  { %v853_v62 = vmul.f32 -1.442695, %v308_v61 }
 0x68d   :  { %993 = vpow2.f32 %v853_v62 }
 0x697   :  { %v994_v63 = vpop.eup %993 }
 0x698   :  { %v312_v3 = vadd.f32 1.0, %v994_v63 }
 0x69a   :  { %995 = vrcp.f32 %v312_v3 }
 0x6a4   :  { %v996_v4 = vpop.eup %995 }
 0x6a5   :  { %v326_v11 = vsub.f32 1.0, %v996_v4  ;;  %v332_v13 = vmul.f32 %v996_v4, %v251_v51 }
 0x6fb   :  { %v317_v6 = vpop.permute.xlu1 %316 }
 0x6fc   :  { %v319_v7 = vmul.f32 %v996_v4, %v317_v6 }
 0x6fe   :  { %321 = vrot.lane.b32.xlu0 %v319_v7, %s1125_s30 }
 0x770   :  { %v322_v8 = vpop.permute.xlu0 %321 }
 0x771   :  { %v324_v9 = vadd.f32 %v322_v8, %v260_v60 }
 0x773   :  { %997 = vtanh.f32 %v324_v9 }
 0x77d   :  { %v998_v10 = vpop.eup %997 }
 0x77e   :  { %328 = vrot.lane.b32.xlu1 %v998_v10, %s1130_s2  ;;  %v506_v10 = vunpack.c.h.bf16 %v423_v46 }
 0x7f0   :  { %v329_v12 = vpop.permute.xlu1 %328 }
 0x7f1   :  { %v331_v14 = vmul.f32 %v329_v12, %v326_v11 }
 0x7f3   :  { %v333_v15 = vadd.f32 %v332_v13, %v331_v14 }
 0x7f5   :  { %v343_v16 = vpack.c.bf16 %v333_v15, %v333_v15 }
 0x7f7   :  { %345 = vrot.lane.b32.xlu0 %v343_v16, %s1130_s2 }
 0x869   :  { %v346_v17 = vpop.permute.xlu0 %345 }
 0x86a   :  { %924 = vmatmul.mubr.msk.bf16.vlgmr.msra.gmra.mrb[4].mxu1 %vm67_vm0, %v346_v17 }
 0x86b   :  { %936 = vmatpush3.bf16.msra.mxu1 %v1223_v1  ;;  %939 = vmatprep.mubr.msk.bf16.mxu1 %vm1129_vm1, %v1128_v0 }
 0x86c   :  { %937 = vmatprep.subr.bf16.mxu1 %v1128_v0 }
 0x86f   :  { %938 = vmatpush3.bf16.msra.mxu1 %v1226_v2 }
 0x870   :  { %951 = vmatprep.subr.bf16.mxu1 %v1128_v0 }
 0x93d   :  { %v384_v18 = vpop.f32.mrb[4].mxu1 }
 0x93e   :  { %v385_v19 = vadd.f32 %v1245_v5, %v384_v18  ;;  %v925_v20 = vpop.f32.mrb[5].mxu1 }
 0x93f   :  { %v387_v21 = vpop.f32.mrb[6].mxu1 }
 0x940   :  { %398 = vrot.lane.b32.xlu1 %v385_v19, %s1125_s30  ;;  %v926_v22 = vpop.f32.mrb[7].mxu1  ;;  %v390_v24 = vadd.f32 %v385_v19, %v342_v23 }
 0x942   :  { %v855_v25 = vmul.f32 -1.442695, %v390_v24 }
 0x944   :  { %999 = vpow2.f32 %v855_v25 }
 0x94e   :  { %v1000_v26 = vpop.eup %999 }
 0x94f   :  { %v394_v27 = vadd.f32 1.0, %v1000_v26 }
 0x951   :  { %1001 = vrcp.f32 %v394_v27 }
 0x95b   :  { %v1002_v28 = vpop.eup %1001 }
 0x95c   :  { %v408_v34 = vsub.f32 1.0, %v1002_v28  ;;  %v414_v36 = vmul.f32 %v1002_v28, %v333_v15 }
 0x9b2   :  { %v399_v29 = vpop.permute.xlu1 %398 }
 0x9b3   :  { %v401_v30 = vmul.f32 %v1002_v28, %v399_v29 }
 0x9b5   :  { %403 = vrot.lane.b32.xlu0 %v401_v30, %s1125_s30 }
 0xa27   :  { %v404_v31 = vpop.permute.xlu0 %403 }
 0xa28   :  { %v406_v32 = vadd.f32 %v404_v31, %v342_v23  ;;  %v587_v31 = vld [vmem:[#allocation3 + $0x18] sm:$0xff]  }
 0xa2a   :  { %1003 = vtanh.f32 %v406_v32  ;;  %v588_v32 = vunpack.c.l.bf16 %v587_v31 }
 0xa34   :  { %v1004_v33 = vpop.eup %1003 }
 0xa35   :  { %410 = vrot.lane.b32.xlu1 %v1004_v33, %s1130_s2 }
 0xaa7   :  { %v411_v35 = vpop.permute.xlu1 %410 }
 0xaa8   :  { %v413_v37 = vmul.f32 %v411_v35, %v408_v34 }
 0xaaa   :  { %v415_v38 = vadd.f32 %v414_v36, %v413_v37 }
 0xaac   :  { %v425_v39 = vpack.c.bf16 %v415_v38, %v415_v38 }
 0xaae   :  { %427 = vrot.lane.b32.xlu0 %v425_v39, %s1130_s2 }
 0xb20   :  { %v428_v40 = vpop.permute.xlu0 %427 }
 0xb21   :  { %932 = vmatmul.mubr.msk.bf16.vlgmr.msra.gmra.mrb[8].mxu0 %vm67_vm0, %v428_v40 }
 0xb22   :  { %944 = vmatpush3.bf16.msra.mxu0 %v1223_v1  ;;  %947 = vmatprep.mubr.msk.bf16.mxu0 %vm1129_vm1, %v1128_v0 }
 0xb23   :  { %945 = vmatprep.subr.bf16.mxu0 %v1128_v0 }
 0xb26   :  { %946 = vmatpush3.bf16.msra.mxu0 %v1226_v2 }
 0xb27   :  { %959 = vmatprep.subr.bf16.mxu0 %v1128_v0 }
 0xbf4   :  { %v466_v41 = vpop.f32.mrb[8].mxu0 }
 0xbf5   :  { %v467_v42 = vadd.f32 %v1245_v5, %v466_v41  ;;  %v933_v43 = vpop.f32.mrb[9].mxu0 }
 0xbf6   :  { %v469_v44 = vpop.f32.mrb[10].mxu0 }
 0xbf7   :  { %480 = vrot.lane.b32.xlu1 %v467_v42, %s1125_s30  ;;  %v934_v45 = vpop.f32.mrb[11].mxu0  ;;  %v472_v48 = vadd.f32 %v467_v42, %v424_v47 }
 0xbf9   :  { %v857_v49 = vmul.f32 -1.442695, %v472_v48 }
 0xbfb   :  { %1005 = vpow2.f32 %v857_v49 }
 0xc05   :  { %v1006_v50 = vpop.eup %1005 }
 0xc06   :  { %v476_v51 = vadd.f32 1.0, %v1006_v50 }
 0xc08   :  { %1007 = vrcp.f32 %v476_v51 }
 0xc12   :  { %v1008_v52 = vpop.eup %1007 }
 0xc13   :  { %v490_v58 = vsub.f32 1.0, %v1008_v52  ;;  %v496_v60 = vmul.f32 %v1008_v52, %v415_v38 }
 0xc69   :  { %v481_v53 = vpop.permute.xlu1 %480 }
 0xc6a   :  { %v483_v54 = vmul.f32 %v1008_v52, %v481_v53 }
 0xc6c   :  { %485 = vrot.lane.b32.xlu0 %v483_v54, %s1125_s30 }
 0xcde   :  { %v486_v55 = vpop.permute.xlu0 %485 }
 0xcdf   :  { %v488_v56 = vadd.f32 %v486_v55, %v424_v47  ;;  %v670_v55 = vunpack.c.h.bf16 %v587_v31 }
 0xce1   :  { %1009 = vtanh.f32 %v488_v56 }
 0xceb   :  { %v1010_v57 = vpop.eup %1009 }
 0xcec   :  { %492 = vrot.lane.b32.xlu1 %v1010_v57, %s1130_s2 }
 0xd5e   :  { %v493_v59 = vpop.permute.xlu1 %492 }
 0xd5f   :  { %v495_v61 = vmul.f32 %v493_v59, %v490_v58 }
 0xd61   :  { %v497_v62 = vadd.f32 %v496_v60, %v495_v61 }
 0xd63   :  { %v507_v63 = vpack.c.bf16 %v497_v62, %v497_v62 }
 0xd65   :  { %509 = vrot.lane.b32.xlu0 %v507_v63, %s1130_s2 }
 0xdd7   :  { %v510_v3 = vpop.permute.xlu0 %509 }
 0xdd8   :  { %940 = vmatmul.mubr.msk.bf16.vlgmr.msra.gmra.mrb[8].mxu1 %vm67_vm0, %v510_v3 }
 0xdd9   :  { %952 = vmatpush3.bf16.msra.mxu1 %v1223_v1  ;;  %955 = vmatprep.mubr.msk.bf16.mxu1 %vm1129_vm1, %v1128_v0 }
 0xdda   :  { %953 = vmatprep.subr.bf16.mxu1 %v1128_v0 }
 0xddd   :  { %954 = vmatpush3.bf16.msra.mxu1 %v1226_v2 }
 0xeab   :  { %v548_v4 = vpop.f32.mrb[8].mxu1 }
 0xeac   :  { %v549_v6 = vadd.f32 %v1245_v5, %v548_v4  ;;  %v941_v7 = vpop.f32.mrb[9].mxu1  ;;  %v980_v4 = vld [vmem:[#allocation8 + $0x8] sm:$0xff]  }
 0xead   :  { %v551_v8 = vpop.f32.mrb[10].mxu1 }
 0xeae   :  { %562 = vrot.lane.b32.xlu1 %v549_v6, %s1125_s30  ;;  %v942_v9 = vpop.f32.mrb[11].mxu1  ;;  %v554_v11 = vadd.f32 %v549_v6, %v506_v10 }
 0xeb0   :  { %v859_v12 = vmul.f32 -1.442695, %v554_v11 }
 0xeb2   :  { %1011 = vpow2.f32 %v859_v12 }
 0xebc   :  { %v1012_v1 = vpop.eup %1011 }
 0xebd   :  { %v558_v13 = vadd.f32 1.0, %v1012_v1 }
 0xebf   :  { %1013 = vrcp.f32 %v558_v13 }
 0xec9   :  { %v1014_v14 = vpop.eup %1013 }
 0xeca   :  { %v572_v19 = vsub.f32 1.0, %v1014_v14  ;;  %v578_v21 = vmul.f32 %v1014_v14, %v497_v62 }
 0xf20   :  { %v563_v15 = vpop.permute.xlu1 %562 }
 0xf21   :  { %v565_v16 = vmul.f32 %v1014_v14, %v563_v15 }
 0xf23   :  { %567 = vrot.lane.b32.xlu0 %v565_v16, %s1125_s30 }
 0xf95   :  { %v568_v2 = vpop.permute.xlu0 %567 }
 0xf96   :  { %v570_v17 = vadd.f32 %v568_v2, %v506_v10 }
 0xf98   :  { %1015 = vtanh.f32 %v570_v17 }
 0xfa2   :  { %v1016_v18 = vpop.eup %1015 }
 0xfa3   :  { %574 = vrot.lane.b32.xlu1 %v1016_v18, %s1130_s2 }
0x1015   :  { %v575_v20 = vpop.permute.xlu1 %574 }
0x1016   :  { %v577_v22 = vmul.f32 %v575_v20, %v572_v19 }
0x1018   :  { %v579_v23 = vadd.f32 %v578_v21, %v577_v22 }
0x101a   :  { %v589_v24 = vpack.c.bf16 %v579_v23, %v579_v23 }
0x101c   :  { %591 = vrot.lane.b32.xlu0 %v589_v24, %s1130_s2 }
0x108e   :  { %v592_v25 = vpop.permute.xlu0 %591 }
0x108f   :  { %948 = vmatmul.mubr.msk.bf16.vlgmr.msra.gmra.mrb[12].mxu0 %vm67_vm0, %v592_v25 }
0x1090   :  { %963 = vmatprep.mubr.msk.bf16.mxu0 %vm1129_vm1, %v1128_v0 }
0x1162   :  { %v630_v26 = vpop.f32.mrb[12].mxu0 }
0x1163   :  { %v631_v27 = vadd.f32 %v1245_v5, %v630_v26  ;;  %v949_v28 = vpop.f32.mrb[13].mxu0 }
0x1164   :  { %v633_v29 = vpop.f32.mrb[14].mxu0 }
0x1165   :  { %644 = vrot.lane.b32.xlu1 %v631_v27, %s1125_s30  ;;  %v950_v30 = vpop.f32.mrb[15].mxu0  ;;  %v636_v33 = vadd.f32 %v631_v27, %v588_v32 }
0x1167   :  { %v861_v34 = vmul.f32 -1.442695, %v636_v33 }
0x1169   :  { %1017 = vpow2.f32 %v861_v34 }
0x1173   :  { %v1018_v35 = vpop.eup %1017 }
0x1174   :  { %v640_v36 = vadd.f32 1.0, %v1018_v35 }
0x1176   :  { %1019 = vrcp.f32 %v640_v36 }
0x1180   :  { %v1020_v37 = vpop.eup %1019 }
0x1181   :  { %v654_v43 = vsub.f32 1.0, %v1020_v37  ;;  %v660_v45 = vmul.f32 %v1020_v37, %v579_v23 }
0x11d7   :  { %v645_v38 = vpop.permute.xlu1 %644 }
0x11d8   :  { %v647_v39 = vmul.f32 %v1020_v37, %v645_v38 }
0x11da   :  { %649 = vrot.lane.b32.xlu0 %v647_v39, %s1125_s30 }
0x124c   :  { %v650_v40 = vpop.permute.xlu0 %649 }
0x124d   :  { %v652_v41 = vadd.f32 %v650_v40, %v588_v32 }
0x124f   :  { %1021 = vtanh.f32 %v652_v41 }
0x1259   :  { %v1022_v42 = vpop.eup %1021 }
0x125a   :  { %656 = vrot.lane.b32.xlu1 %v1022_v42, %s1130_s2 }
0x12cc   :  { %v657_v44 = vpop.permute.xlu1 %656 }
0x12cd   :  { %v659_v46 = vmul.f32 %v657_v44, %v654_v43 }
0x12cf   :  { %v661_v47 = vadd.f32 %v660_v45, %v659_v46 }
0x12d1   :  { %v671_v48 = vpack.c.bf16 %v661_v47, %v661_v47 }
0x12d3   :  { %673 = vrot.lane.b32.xlu0 %v671_v48, %s1130_s2 }
0x1345   :  { %v674_v49 = vpop.permute.xlu0 %673 }
0x1346   :  { %956 = vmatmul.mubr.msk.bf16.vlgmr.msra.gmra.mrb[12].mxu1 %vm67_vm0, %v674_v49 }
0x1419   :  { %v712_v50 = vpop.f32.mrb[12].mxu1 }
0x141a   :  { %v713_v51 = vadd.f32 %v1245_v5, %v712_v50  ;;  %v957_v52 = vpop.f32.mrb[13].mxu1  ;;  %v979_v5 = vld [vmem:[#allocation8] sm:$0xff]  }
0x141b   :  { %v715_v53 = vpop.f32.mrb[14].mxu1  ;;  %960 = vmatpush3.bf16.msra.mxu0 %v979_v5 }
0x141c   :  { %726 = vrot.lane.b32.xlu1 %v713_v51, %s1125_s30  ;;  %v958_v54 = vpop.f32.mrb[15].mxu1  ;;  %v718_v56 = vadd.f32 %v713_v51, %v670_v55  ;;  %961 = vmatprep.subr.bf16.mxu0 %v1128_v0  ;;  %v864_v0 = vld [vmem:[%s1348_s4] ss:$0 sm:$0xff] }
0x141e   :  { %v863_v57 = vmul.f32 -1.442695, %v718_v56 }
0x141f   :  { %962 = vmatpush3.bf16.msra.mxu0 %v980_v4 }
0x1420   :  { %1023 = vpow2.f32 %v863_v57 }
0x142a   :  { %v1024_v58 = vpop.eup %1023 }
0x142b   :  { %v722_v59 = vadd.f32 1.0, %v1024_v58 }
0x142d   :  { %1025 = vrcp.f32 %v722_v59 }
0x1437   :  { %v1026_v60 = vpop.eup %1025 }
0x1438   :  { %v736_v7 = vsub.f32 1.0, %v1026_v60  ;;  %v742_v9 = vmul.f32 %v1026_v60, %v661_v47 }
0x148e   :  { %v727_v61 = vpop.permute.xlu1 %726 }
0x148f   :  { %v729_v62 = vmul.f32 %v1026_v60, %v727_v61 }
0x1491   :  { %731 = vrot.lane.b32.xlu0 %v729_v62, %s1125_s30 }
0x1503   :  { %v732_v63 = vpop.permute.xlu0 %731 }
0x1504   :  { %v734_v3 = vadd.f32 %v732_v63, %v670_v55 }
0x1506   :  { %1027 = vtanh.f32 %v734_v3 }
0x1510   :  { %v1028_v6 = vpop.eup %1027 }
0x1511   :  { %738 = vrot.lane.b32.xlu1 %v1028_v6, %s1130_s2 }
0x1583   :  { %v739_v8 = vpop.permute.xlu1 %738 }
0x1584   :  { %v741_v10 = vmul.f32 %v739_v8, %v736_v7 }
0x1586   :  { %v743_v11 = vadd.f32 %v742_v9, %v741_v10 }
0x1588   :  { %751 = vrot.lane.b32.xlu1 %v743_v11, %s1130_s2  ;;  %v758_v12 = vpack.c.bf16 %v743_v11, %v743_v11 }
0x158a   :  { %771 = vrot.lane.b32.xlu0 %v758_v12, %s1130_s2 }
0x15fa   :  { %v752_v1 = vpop.permute.xlu1 %751 }
0x15fb   :  { %754 = vst.msk [vmem:[#allocation2] sm:$0xff] %vm67_vm0, %v752_v1 }
0x15fc   :  { %v772_v13 = vpop.permute.xlu0 %771 }
0x15fd   :  { %964 = vmatmul.mubr.msk.bf16.vlgmr.msra.gmra.mrb[16].mxu0 %vm67_vm0, %v772_v13 }
0x16d0   :  { %v822_v14 = vpop.f32.mrb[16].mxu0 }
0x16d1   :  { %v823_v15 = vadd.f32 %v864_v0, %v822_v14  ;;  %v965_v16 = vpop.f32.mrb[17].mxu0 }
0x16d2   :  { %v825_v2 = vpop.f32.mrb[18].mxu0 }
0x16d3   :  { %828 = vst [vmem:[#allocation9] sm:$0xff] %v823_v15  ;;  %v966_v17 = vpop.f32.mrb[19].mxu0 }
0x16d4   :  { %1106 = shalt.err (!%p1103_p0)
}
0x16d5   :  { %s1107_s4 = scalar_lea.hbm %s1349_s5, 128 }
0x16d6   :  { %p1108_p1 = scmp.ne.s32.totalorder %s1349_s5, %s1107_s4  ;;  %p1111_p2 = scmp.lt.u32.totalorder %s1107_s4, %s1349_s5 }
0x16d8   :  { %p1113_p3 = pnand %p1111_p2, %p1108_p1 }
0x16da   :  { %1116 = shalt.err (!%p1113_p3)
}
0x16db   :  { %838 = dma.vmem_to_hbm [thread:$0]  %s836_s9, 128, %s1349_s5, [#allocation5]  }
0x16dc   :  { %1121 = dma.done.wait [#allocation5], 128  }
0x16dd   :  { %1122 = vsyncadd [#allocation5], 4294967168 }
0x16de   :  { %842 = vsyncpa [#allocation4], 1 }
0x16df   :  { %843 = vsyncpa [#allocation7], 1 }
0x16e0   :  { %844 = vsyncpa [#allocation5], 1 }

</bundles_post_ra>
